<compile_context>
chip_gen: v5e
topology: v5e:2x2
jax: 0.10.0
libtpu: 0.0.40
codegen_flags: <defaults>
</compile_context>

<pallas_src>
import functools

import jax
import jax.numpy as jnp
from jax import lax
from jax.experimental import pallas as pl
from jax.experimental.pallas import tpu as pltpu


def _round_up(x, m):
    return (x + m - 1) // m * m


def _supcon_kernel(q_ref, k_ref, lab_q_ref, lab_k_ref, o_ref,
                   m_sc, l_sc, s_sc, c_sc, *,
                   tq, tk, n_valid, has_pad, scale_out):
    qi = pl.program_id(0)
    ki = pl.program_id(1)

    @pl.when(ki == 0)
    def _init():
        m_sc[...] = jnp.full_like(m_sc, -jnp.inf)
        l_sc[...] = jnp.zeros_like(l_sc)
        s_sc[...] = jnp.zeros_like(s_sc)
        c_sc[...] = jnp.zeros_like(c_sc)

    # Scores already carry the 1/temperature scale (folded into q by wrapper).
    # Contract last dims of both operands -> no transposed copy of k.
    s = lax.dot_general(q_ref[...], k_ref[...],
                        dimension_numbers=(((1,), (1,)), ((), ())),
                        preferred_element_type=jnp.float32)          # [TQ, TK] f32

    # Build masks in-kernel (cheap VPU work, hides under the MXU).
    row_idx = qi * tq + lax.broadcasted_iota(jnp.int32, (tq, tk), 0)
    col_idx = ki * tk + lax.broadcasted_iota(jnp.int32, (tq, tk), 1)
    not_self = row_idx != col_idx
    if has_pad:
        col_valid = col_idx < n_valid
        lmask = jnp.logical_and(not_self, col_valid)
        s_for_max = jnp.where(col_valid, s, -jnp.inf)
    else:
        lmask = not_self
        s_for_max = s

    same = lab_q_ref[...] == lab_k_ref[...]          # [TQ,1] == [1,TK] -> [TQ,TK]
    pmask_f = jnp.logical_and(same, lmask).astype(jnp.float32)
    lmask_f = lmask.astype(jnp.float32)

    # Online masked log-sum-exp.  The running max includes the self column
    # (same as the reference's row-max); self/pad columns are excluded from the
    # exp-sum via lmask, exactly as in the reference.
    m_prev = m_sc[...]
    m_new = jnp.maximum(m_prev, jnp.max(s_for_max, axis=1, keepdims=True))
    alpha = jnp.exp(m_prev - m_new)
    p = jnp.exp(s - m_new) * lmask_f
    l_sc[...] = alpha * l_sc[...] + jnp.sum(p, axis=1, keepdims=True)
    m_sc[...] = m_new
    # Positives: running sums of pmask*logits and pmask counts.
    s_sc[...] += jnp.sum(pmask_f * s, axis=1, keepdims=True)
    c_sc[...] += jnp.sum(pmask_f, axis=1, keepdims=True)

    @pl.when(ki == pl.num_programs(1) - 1)
    def _finalize():
        lse = m_sc[...] + jnp.log(l_sc[...])         # log sum_j lmask * exp(s_ij)
        # mean_log_prob_pos = sum(pmask*s)/sum(pmask) - lse  (exact division on a
        # [T,1] epilogue vector; approx reciprocal not worth the precision loss)
        mean_log_prob_pos = s_sc[...] / c_sc[...] - lse
        o_ref[...] = (scale_out * mean_log_prob_pos).astype(o_ref.dtype)


def supcon_loss(features, labels=None, *, temperature=0.07, base_temperature=0.07,
                contrast_mode="all", block=256, matmul_dtype=jnp.bfloat16):
    """features: [bsz, n_views, ...]; labels: optional [bsz] int labels."""
    if features.ndim < 3:
        raise ValueError("`features` must be at least [bsz, n_views, ...]")
    if features.ndim > 3:
        features = features.reshape(features.shape[0], features.shape[1], -1)
    if contrast_mode != "all":
        # TODO(synk): contrast_mode='one', `real_label`, explicit `mask`, and
        # `if_weak` paths are not implemented in the kernel.
        raise ValueError("only contrast_mode='all' (default forward path) is supported")

    bsz, n_views, dim = features.shape
    n = bsz * n_views

    # torch.cat(torch.unbind(features, dim=1), dim=0) -> view-major stacking
    cf = jnp.transpose(features, (1, 0, 2)).reshape(n, dim).astype(jnp.float32)

    # Per-row int labels. labels=None degenerates to SimCLR (eye(bsz) mask),
    # i.e. "same sample index" -> use arange(bsz) as labels.
    if labels is None:
        eff = jnp.arange(bsz, dtype=jnp.int32)
    else:
        eff = labels.reshape(-1).astype(jnp.int32)
    row_labels = jnp.tile(eff, n_views)                  # [n], view-major: r -> r % bsz

    # Tile size (lane-aligned when multi-tile) and padding.
    if n <= block:
        t = _round_up(n, 8)
    else:
        t = _round_up(block, 128)
    n_pad = _round_up(n, t)
    has_pad = n_pad != n
    if has_pad:
        cf = jnp.pad(cf, ((0, n_pad - n), (0, 0)))
        row_labels = jnp.pad(row_labels, (0, n_pad - n), constant_values=-1)

    # Fold 1/temperature into the q operand, fused with the cast we need anyway.
    inv_t = 1.0 / float(temperature)
    q_arr = (cf * inv_t).astype(matmul_dtype)
    k_arr = cf.astype(matmul_dtype)
    lab_row = row_labels.reshape(n_pad, 1)
    lab_col = row_labels.reshape(1, n_pad)

    kernel = functools.partial(
        _supcon_kernel, tq=t, tk=t, n_valid=n, has_pad=has_pad,
        scale_out=-(float(temperature) / float(base_temperature)))

    per_row = pl.pallas_call(
        kernel,
        out_shape=jax.ShapeDtypeStruct((n_pad, 1), jnp.float32),
        grid_spec=pltpu.PrefetchScalarGridSpec(
            num_scalar_prefetch=0,
            grid=(n_pad // t, n_pad // t),
            in_specs=[
                pl.BlockSpec((t, dim), lambda qi, ki: (qi, 0)),   # anchor rows
                pl.BlockSpec((t, dim), lambda qi, ki: (ki, 0)),   # contrast rows
                pl.BlockSpec((t, 1), lambda qi, ki: (qi, 0)),     # row labels
                pl.BlockSpec((1, t), lambda qi, ki: (0, ki)),     # col labels
            ],
            out_specs=pl.BlockSpec((t, 1), lambda qi, ki: (qi, 0)),
            scratch_shapes=[pltpu.VMEM((t, 1), jnp.float32)] * 4),  # m, l, s, cnt
        compiler_params=pltpu.CompilerParams(
            dimension_semantics=("parallel", "arbitrary")),
    )(q_arr, k_arr, lab_row, lab_col)

    # loss.view(anchor_count, batch_size).mean() == mean over all n anchors
    return jnp.mean(per_row[:n, 0])


def _supcon_loss_ref(features, labels=None, *, temperature=0.07,
                     base_temperature=0.07):
    """Pure-JAX reference mirroring the PyTorch forward (contrast_mode='all')."""
    bsz, n_views, dim = features.shape
    cf = jnp.transpose(features, (1, 0, 2)).reshape(n_views * bsz, dim)
    if labels is None:
        base_mask = jnp.eye(bsz, dtype=jnp.float32)
    else:
        lab = labels.reshape(-1, 1)
        base_mask = (lab == lab.T).astype(jnp.float32)
    n = bsz * n_views
    adc = (cf @ cf.T) / temperature
    logits = adc - jnp.max(adc, axis=1, keepdims=True)
    mask = jnp.tile(base_mask, (n_views, n_views))
    logits_mask = 1.0 - jnp.eye(n, dtype=jnp.float32)
    mask = mask * logits_mask
    exp_logits = jnp.exp(logits) * logits_mask
    log_prob = logits - jnp.log(jnp.sum(exp_logits, axis=1, keepdims=True))
    mean_log_prob_pos = jnp.sum(mask * log_prob, axis=1) / jnp.sum(mask, axis=1)
    loss = -(temperature / base_temperature) * mean_log_prob_pos
    return jnp.mean(loss)


if __name__ == "__main__":
    key = jax.random.PRNGKey(0)
    k_feat, k_lab, k_feat2, k_lab2, k_feat3, k_lab3 = jax.random.split(key, 6)

    def _make(kf, kl, bsz, n_views, dim, n_cls):
        f = jax.random.normal(kf, (bsz, n_views, dim), dtype=jnp.float32)
        f = f / jnp.linalg.norm(f, axis=-1, keepdims=True)   # SupCon expects L2-norm
        lab = jax.random.randint(kl, (bsz,), 0, n_cls)
        return f, lab

    # Config 1: small, single tile (grid 1x1)
    feats, labels = _make(k_feat, k_lab, 8, 2, 32, 4)
    # Config 2: multi-tile (N=256, block=128 -> grid 2x2, online accumulation)
    feats2, labels2 = _make(k_feat2, k_lab2, 128, 2, 32, 4)
    # Config 3: padded case (N=10 -> padded to 16)
    feats3, labels3 = _make(k_feat3, k_lab3, 5, 2, 32, 3)

    # bf16 MXU path (default)
    loss_sup = supcon_loss(feats, labels)
    loss_unsup = supcon_loss(feats, None)
    loss_big = supcon_loss(feats2, labels2, block=128)
    # f32 MXU path for tight-tolerance checks of tiling / masking / online LSE
    loss_sup_f32 = supcon_loss(feats, labels, matmul_dtype=jnp.float32)
    loss_unsup_f32 = supcon_loss(feats, None, matmul_dtype=jnp.float32)
    loss_big_f32 = supcon_loss(feats2, labels2, block=128, matmul_dtype=jnp.float32)
    loss_pad_f32 = supcon_loss(feats3, labels3, matmul_dtype=jnp.float32)

    jax.block_until_ready((loss_sup, loss_unsup, loss_big,
                           loss_sup_f32, loss_unsup_f32, loss_big_f32, loss_pad_f32))

    ref_sup = _supcon_loss_ref(feats, labels)
    ref_unsup = _supcon_loss_ref(feats, None)
    ref_big = _supcon_loss_ref(feats2, labels2)
    ref_pad = _supcon_loss_ref(feats3, labels3)

    assert jnp.allclose(loss_sup_f32, ref_sup, atol=1e-4, rtol=1e-4), (loss_sup_f32, ref_sup)
    assert jnp.allclose(loss_unsup_f32, ref_unsup, atol=1e-4, rtol=1e-4), (loss_unsup_f32, ref_unsup)
    assert jnp.allclose(loss_big_f32, ref_big, atol=1e-4, rtol=1e-4), (loss_big_f32, ref_big)
    assert jnp.allclose(loss_pad_f32, ref_pad, atol=1e-4, rtol=1e-4), (loss_pad_f32, ref_pad)
    assert jnp.allclose(loss_sup, ref_sup, atol=5e-2, rtol=5e-2), (loss_sup, ref_sup)
    assert jnp.allclose(loss_unsup, ref_unsup, atol=5e-2, rtol=5e-2), (loss_unsup, ref_unsup)
    assert jnp.allclose(loss_big, ref_big, atol=5e-2, rtol=5e-2), (loss_big, ref_big)

    print("KERNEL_OK")
</pallas_src>

<mosaic_0001>
module attributes {stable_mosaic.version = 11 : i64} {
  func.func @_supcon_kernel(%arg0: i32, %arg1: i32, %arg2: memref<16x32xbf16, #tpu.memory_space<vmem>>, %arg3: memref<16x32xbf16, #tpu.memory_space<vmem>>, %arg4: memref<16x1xi32, #tpu.memory_space<vmem>>, %arg5: memref<1x16xi32, #tpu.memory_space<vmem>>, %arg6: memref<16x1xf32, #tpu.memory_space<vmem>>, %arg7: memref<16x1xf32, #tpu.memory_space<vmem>>, %arg8: memref<16x1xf32, #tpu.memory_space<vmem>>, %arg9: memref<16x1xf32, #tpu.memory_space<vmem>>, %arg10: memref<16x1xf32, #tpu.memory_space<vmem>>) attributes {dimension_semantics = [#tpu.dimension_semantics<parallel>, #tpu.dimension_semantics<arbitrary>], iteration_bounds = array<i64: 1, 1>, scalar_prefetch = 0 : i64, scratch_operands = 4 : i64, tpu.core_type = #tpu.core_type<tc>, window_params = [{transform_indices = @transform_0, window_bounds = array<i64: 16, 32>}, {transform_indices = @transform_1, window_bounds = array<i64: 16, 32>}, {transform_indices = @transform_2, window_bounds = array<i64: 16, 1>}, {transform_indices = @transform_3, window_bounds = array<i64: 1, 16>}, {transform_indices = @transform_4, window_bounds = array<i64: 16, 1>}]} {
    %c0_i32 = arith.constant 0 : i32
    %0 = arith.cmpi eq, %arg1, %c0_i32 : i32
    %1 = arith.extui %0 : i1 to i32
    %c0_i32_0 = arith.constant 0 : i32
    %2 = arith.cmpi ne, %1, %c0_i32_0 : i32
    scf.if %2 {
      %cst_31 = arith.constant 0xFF800000 : f32
      %56 = vector.broadcast %cst_31 : f32 to vector<16x1xf32>
      %c0_32 = arith.constant 0 : index
      %c0_33 = arith.constant 0 : index
      %57 = vector.load %arg7[%c0_32, %c0_33] : memref<16x1xf32, #tpu.memory_space<vmem>>, vector<16x1xf32>
      tpu.vector_store %arg7[%c0_32, %c0_33], %56 {strides = array<i32>} : memref<16x1xf32, #tpu.memory_space<vmem>>, vector<16x1xf32>,
      %cst_34 = arith.constant 0.000000e+00 : f32
      %58 = vector.broadcast %cst_34 : f32 to vector<16x1xf32>
      %c0_35 = arith.constant 0 : index
      %c0_36 = arith.constant 0 : index
      %59 = vector.load %arg8[%c0_35, %c0_36] : memref<16x1xf32, #tpu.memory_space<vmem>>, vector<16x1xf32>
      tpu.vector_store %arg8[%c0_35, %c0_36], %58 {strides = array<i32>} : memref<16x1xf32, #tpu.memory_space<vmem>>, vector<16x1xf32>,
      %cst_37 = arith.constant 0.000000e+00 : f32
      %60 = vector.broadcast %cst_37 : f32 to vector<16x1xf32>
      %c0_38 = arith.constant 0 : index
      %c0_39 = arith.constant 0 : index
      %61 = vector.load %arg9[%c0_38, %c0_39] : memref<16x1xf32, #tpu.memory_space<vmem>>, vector<16x1xf32>
      tpu.vector_store %arg9[%c0_38, %c0_39], %60 {strides = array<i32>} : memref<16x1xf32, #tpu.memory_space<vmem>>, vector<16x1xf32>,
      %cst_40 = arith.constant 0.000000e+00 : f32
      %62 = vector.broadcast %cst_40 : f32 to vector<16x1xf32>
      %c0_41 = arith.constant 0 : index
      %c0_42 = arith.constant 0 : index
      %63 = vector.load %arg10[%c0_41, %c0_42] : memref<16x1xf32, #tpu.memory_space<vmem>>, vector<16x1xf32>
      tpu.vector_store %arg10[%c0_41, %c0_42], %62 {strides = array<i32>} : memref<16x1xf32, #tpu.memory_space<vmem>>, vector<16x1xf32>,
    } else {
    }
    %c0 = arith.constant 0 : index
    %c0_1 = arith.constant 0 : index
    %3 = vector.load %arg2[%c0, %c0_1] : memref<16x32xbf16, #tpu.memory_space<vmem>>, vector<16x32xbf16>
    %c0_2 = arith.constant 0 : index
    %c0_3 = arith.constant 0 : index
    %4 = vector.load %arg3[%c0_2, %c0_3] : memref<16x32xbf16, #tpu.memory_space<vmem>>, vector<16x32xbf16>
    %cst = arith.constant dense<0.000000e+00> : vector<16x16xf32>
    %5 = tpu.matmul %3, %4, %cst {dimension_numbers = #tpu.dot_dimension_numbers<[1], [1], [0], [0], [0, 0, 1, 0], [], []>} : vector<16x32xbf16>, vector<16x32xbf16>, vector<16x16xf32> -> vector<16x16xf32>
    %c16_i32 = arith.constant 16 : i32
    %6 = arith.muli %arg0, %c16_i32 : i32
    %7 = tpu.iota {dimensions = array<i32: 0>} : vector<16x16xi32>
    %8 = vector.broadcast %6 : i32 to vector<16x16xi32>
    %9 = arith.addi %8, %7 : vector<16x16xi32>
    %c16_i32_4 = arith.constant 16 : i32
    %10 = arith.muli %arg1, %c16_i32_4 : i32
    %11 = tpu.iota {dimensions = array<i32: 1>} : vector<16x16xi32>
    %12 = vector.broadcast %10 : i32 to vector<16x16xi32>
    %13 = arith.addi %12, %11 : vector<16x16xi32>
    %14 = arith.cmpi ne, %9, %13 : vector<16x16xi32>
    %c0_5 = arith.constant 0 : index
    %c0_6 = arith.constant 0 : index
    %15 = vector.load %arg4[%c0_5, %c0_6] : memref<16x1xi32, #tpu.memory_space<vmem>>, vector<16x1xi32>
    %c0_7 = arith.constant 0 : index
    %c0_8 = arith.constant 0 : index
    %16 = vector.load %arg5[%c0_7, %c0_8] : memref<1x16xi32, #tpu.memory_space<vmem>>, vector<1x16xi32>
    %17 = vector.broadcast %15 : vector<16x1xi32> to vector<16x16xi32>
    %18 = vector.broadcast %16 : vector<1x16xi32> to vector<16x16xi32>
    %19 = arith.cmpi eq, %17, %18 : vector<16x16xi32>
    %20 = arith.andi %19, %14 : vector<16x16xi1>
    %21 = arith.extui %20 : vector<16x16xi1> to vector<16x16xi32>
    %22 = arith.sitofp %21 : vector<16x16xi32> to vector<16x16xf32>
    %23 = arith.extui %14 : vector<16x16xi1> to vector<16x16xi32>
    %24 = arith.sitofp %23 : vector<16x16xi32> to vector<16x16xf32>
    %c0_9 = arith.constant 0 : index
    %c0_10 = arith.constant 0 : index
    %25 = vector.load %arg7[%c0_9, %c0_10] : memref<16x1xf32, #tpu.memory_space<vmem>>, vector<16x1xf32>
    %cst_11 = arith.constant dense<0xFF800000> : vector<16xf32>
    %26 = vector.multi_reduction <maximumf>, %5, %cst_11 [1] : vector<16x16xf32> to vector<16xf32>
    %27 = vector.shape_cast %26 : vector<16xf32> to vector<16x1xf32>
    %28 = arith.maximumf %25, %27 : vector<16x1xf32>
    %29 = arith.subf %25, %28 : vector<16x1xf32>
    %30 = math.exp %29 : vector<16x1xf32>
    %31 = vector.broadcast %28 : vector<16x1xf32> to vector<16x16xf32>
    %32 = arith.subf %5, %31 : vector<16x16xf32>
    %33 = math.exp %32 : vector<16x16xf32>
    %34 = arith.mulf %33, %24 : vector<16x16xf32>
    %c0_12 = arith.constant 0 : index
    %c0_13 = arith.constant 0 : index
    %35 = vector.load %arg8[%c0_12, %c0_13] : memref<16x1xf32, #tpu.memory_space<vmem>>, vector<16x1xf32>
    %36 = arith.mulf %30, %35 : vector<16x1xf32>
    %cst_14 = arith.constant dense<0.000000e+00> : vector<16xf32>
    %37 = vector.multi_reduction <add>, %34, %cst_14 [1] : vector<16x16xf32> to vector<16xf32>
    %38 = vector.shape_cast %37 : vector<16xf32> to vector<16x1xf32>
    %39 = arith.addf %36, %38 : vector<16x1xf32>
    %c0_15 = arith.constant 0 : index
    %c0_16 = arith.constant 0 : index
    %40 = vector.load %arg8[%c0_15, %c0_16] : memref<16x1xf32, #tpu.memory_space<vmem>>, vector<16x1xf32>
    tpu.vector_store %arg8[%c0_15, %c0_16], %39 {strides = array<i32>} : memref<16x1xf32, #tpu.memory_space<vmem>>, vector<16x1xf32>,
    %c0_17 = arith.constant 0 : index
    %c0_18 = arith.constant 0 : index
    %41 = vector.load %arg7[%c0_17, %c0_18] : memref<16x1xf32, #tpu.memory_space<vmem>>, vector<16x1xf32>
    tpu.vector_store %arg7[%c0_17, %c0_18], %28 {strides = array<i32>} : memref<16x1xf32, #tpu.memory_space<vmem>>, vector<16x1xf32>,
    %c0_19 = arith.constant 0 : index
    %c0_20 = arith.constant 0 : index
    %42 = vector.load %arg9[%c0_19, %c0_20] : memref<16x1xf32, #tpu.memory_space<vmem>>, vector<16x1xf32>
    %43 = arith.mulf %22, %5 : vector<16x16xf32>
    %cst_21 = arith.constant dense<0.000000e+00> : vector<16xf32>
    %44 = vector.multi_reduction <add>, %43, %cst_21 [1] : vector<16x16xf32> to vector<16xf32>
    %45 = vector.shape_cast %44 : vector<16xf32> to vector<16x1xf32>
    %46 = arith.addf %42, %45 : vector<16x1xf32>
    %c0_22 = arith.constant 0 : index
    %c0_23 = arith.constant 0 : index
    %47 = vector.load %arg9[%c0_22, %c0_23] : memref<16x1xf32, #tpu.memory_space<vmem>>, vector<16x1xf32>
    tpu.vector_store %arg9[%c0_22, %c0_23], %46 {strides = array<i32>} : memref<16x1xf32, #tpu.memory_space<vmem>>, vector<16x1xf32>,
    %c0_24 = arith.constant 0 : index
    %c0_25 = arith.constant 0 : index
    %48 = vector.load %arg10[%c0_24, %c0_25] : memref<16x1xf32, #tpu.memory_space<vmem>>, vector<16x1xf32>
    %cst_26 = arith.constant dense<0.000000e+00> : vector<16xf32>
    %49 = vector.multi_reduction <add>, %22, %cst_26 [1] : vector<16x16xf32> to vector<16xf32>
    %50 = vector.shape_cast %49 : vector<16xf32> to vector<16x1xf32>
    %51 = arith.addf %48, %50 : vector<16x1xf32>
    %c0_27 = arith.constant 0 : index
    %c0_28 = arith.constant 0 : index
    %52 = vector.load %arg10[%c0_27, %c0_28] : memref<16x1xf32, #tpu.memory_space<vmem>>, vector<16x1xf32>
    tpu.vector_store %arg10[%c0_27, %c0_28], %51 {strides = array<i32>} : memref<16x1xf32, #tpu.memory_space<vmem>>, vector<16x1xf32>,
    %c0_i32_29 = arith.constant 0 : i32
    %53 = arith.cmpi eq, %arg1, %c0_i32_29 : i32
    %54 = arith.extui %53 : i1 to i32
    %c0_i32_30 = arith.constant 0 : i32
    %55 = arith.cmpi ne, %54, %c0_i32_30 : i32
    scf.if %55 {
      %c0_31 = arith.constant 0 : index
      %c0_32 = arith.constant 0 : index
      %56 = vector.load %arg7[%c0_31, %c0_32] : memref<16x1xf32, #tpu.memory_space<vmem>>, vector<16x1xf32>
      %c0_33 = arith.constant 0 : index
      %c0_34 = arith.constant 0 : index
      %57 = vector.load %arg8[%c0_33, %c0_34] : memref<16x1xf32, #tpu.memory_space<vmem>>, vector<16x1xf32>
      %58 = math.log %57 : vector<16x1xf32>
      %59 = arith.addf %56, %58 : vector<16x1xf32>
      %c0_35 = arith.constant 0 : index
      %c0_36 = arith.constant 0 : index
      %60 = vector.load %arg9[%c0_35, %c0_36] : memref<16x1xf32, #tpu.memory_space<vmem>>, vector<16x1xf32>
      %c0_37 = arith.constant 0 : index
      %c0_38 = arith.constant 0 : index
      %61 = vector.load %arg10[%c0_37, %c0_38] : memref<16x1xf32, #tpu.memory_space<vmem>>, vector<16x1xf32>
      %62 = arith.divf %60, %61 : vector<16x1xf32>
      %63 = arith.subf %62, %59 : vector<16x1xf32>
      %cst_39 = arith.constant -1.000000e+00 : f32
      %64 = vector.broadcast %cst_39 : f32 to vector<16x1xf32>
      %65 = arith.mulf %64, %63 : vector<16x1xf32>
      %c0_40 = arith.constant 0 : index
      %c0_41 = arith.constant 0 : index
      %66 = vector.load %arg6[%c0_40, %c0_41] : memref<16x1xf32, #tpu.memory_space<vmem>>, vector<16x1xf32>
      tpu.vector_store %arg6[%c0_40, %c0_41], %65 {strides = array<i32>} : memref<16x1xf32, #tpu.memory_space<vmem>>, vector<16x1xf32>,
    } else {
    }
    return
  }
  func.func @transform_0(%arg0: i32, %arg1: i32) -> (i32, i32) {
    %c0_i32 = arith.constant 0 : i32
    %c0_i32_0 = arith.constant 0 : i32
    return %arg0, %c0_i32 : i32, i32
  }
  func.func @transform_1(%arg0: i32, %arg1: i32) -> (i32, i32) {
    %c0_i32 = arith.constant 0 : i32
    %c0_i32_0 = arith.constant 0 : i32
    return %arg1, %c0_i32 : i32, i32
  }
  func.func @transform_2(%arg0: i32, %arg1: i32) -> (i32, i32) {
    %c0_i32 = arith.constant 0 : i32
    %c0_i32_0 = arith.constant 0 : i32
    return %arg0, %c0_i32 : i32, i32
  }
  func.func @transform_3(%arg0: i32, %arg1: i32) -> (i32, i32) {
    %c0_i32 = arith.constant 0 : i32
    %c0_i32_0 = arith.constant 0 : i32
    return %c0_i32, %arg1 : i32, i32
  }
  func.func @transform_4(%arg0: i32, %arg1: i32) -> (i32, i32) {
    %c0_i32 = arith.constant 0 : i32
    %c0_i32_0 = arith.constant 0 : i32
    return %arg0, %c0_i32 : i32, i32
  }
}

</mosaic_0001>

<bundles_post_ra>
// kernel: tpu_custom_call.1
= control target key start
LH: loop header
LB: loop body
LE: loop exit
PB: predicated region body
PF: predicated region fallthrough
CT: control target
= control target key end

     0   :  { %vm45_vm0 = vcmask 261120   ;;  %v275_v1 = vmov 0   ;;  %vm22_vm1 = vcmask 7168   ;;  %v276_v6 = vmov -inf   ;;  %s360_s1 = inlined_call_operand.vmem [shape: bf16[16,32], index: 1, kind: input, shape index: {}]   ;;  %s361_s2 = inlined_call_operand.vmem [shape: s32[16,1], index: 2, kind: input, shape index: {}]   ;;  %s362_s3 = inlined_call_operand.vmem [shape: s32[1,16], index: 3, kind: input, shape index: {}]   ;;  %s363_s0 = inlined_call_operand.vmem [shape: bf16[16,32], index: 0, kind: input, shape index: {}]   ;;  %s364_s4 = inlined_call_operand.vmem [shape: f32[16,1], index: 4, kind: output, shape index: {}]  }
   0x1   :  { %v251_v0 = vld [vmem:[%s360_s1] sm:$0xff]  ;;  %256 = vset.pattern.permute.xlu2 %v275_v1  ;;  %255 = vset.pattern.permute.xlu1 %v275_v1  ;;  %v81_v5 = vld [vmem:[%s361_s2 + $0x8] sm:$0xff]  ;;  %23 = vst.msk [vmem:[#allocation2] sm:$0xff] %vm22_vm1, %v276_v6  ;;  %v277_v7 = vmov 0.0   ;;  %vm104_vm2 = vcmask 130048   ;;  %v67_v21 = vlaneseq }
   0x2   :  { %v80_v2 = vld [vmem:[%s361_s2] sm:$0xff]  ;;  %257 = vset.pattern.permute.xlu0 %v275_v1  ;;  %v50_v3 = vsel %vm45_vm0, %v251_v0, 0  ;;  %24 = vst.msk [vmem:[#allocation2 + $0x8] sm:$0xff] %vm22_vm1, %v276_v6 }
   0x3   :  { %84 = vperm.xlu2 %256, %v80_v2   ;;  %59 = vmatpush.bf16.xpose.msra.mxu0 %v50_v3  ;;  %v250_v4 = vld [vmem:[%s363_s0] sm:$0xff]  ;;  %25 = vst.msk [vmem:[#allocation3] sm:$0xff] %vm22_vm1, %v277_v7  ;;  %v68_v22 = vshrl.u32 %v67_v21, 7  ;;  %v75_v23 = vand.u32 127, %v67_v21 }
   0x4   :  { %26 = vst.msk [vmem:[#allocation3 + $0x8] sm:$0xff] %vm22_vm1, %v277_v7  ;;  %v258_v24 = vld [vmem:[%s362_s3] ss:$0 sm:$0xff] }
   0x5   :  { %27 = vst.msk [vmem:[#allocation4] sm:$0xff] %vm22_vm1, %v277_v7  ;;  %v69_v25 = vadd.s32 8, %v68_v22  ;;  %vm78_vm3 = vcmp.ne.s32.totalorder %v68_v22, %v75_v23 }
   0x6   :  { %28 = vst.msk [vmem:[#allocation4 + $0x8] sm:$0xff] %vm22_vm1, %v277_v7  ;;  %v248_v36 = vsel %vm78_vm3, 1.0, %v277_v7 }
   0x7   :  { %29 = vst.msk [vmem:[#allocation5] sm:$0xff] %vm22_vm1, %v277_v7  ;;  %vm79_vm5 = vcmp.ne.s32.totalorder %v69_v25, %v75_v23 }
   0x8   :  { %30 = vst.msk [vmem:[#allocation5 + $0x8] sm:$0xff] %vm22_vm1, %v277_v7  ;;  %v327_v12 = vld [vmem:[#allocation2] sm:$0xff]  ;;  %v249_v41 = vsel %vm79_vm5, 1.0, %v277_v7 }
   0x9   :  { %v103_v16 = vld [vmem:[#allocation2 + $0x8] sm:$0xff] }
   0xa   :  { %245 = vmatmul.msk.bf16.vlgmr.msra.gmra.mxu0 %vm45_vm0, %v250_v4  ;;  %v137_v59 = vld [vmem:[#allocation3] sm:$0xff] }
   0xb   :  { %87 = vperm.xlu2 %256, %v81_v5   ;;  %v138_v2 = vld [vmem:[#allocation3 + $0x8] sm:$0xff] }
   0xd   :  { %v155_v22 = vld [vmem:[#allocation4 + $0x8] sm:$0xff] }
   0xe   :  { %v168_v50 = vld [vmem:[#allocation5] sm:$0xff] }
   0xf   :  { %v169_v49 = vld [vmem:[#allocation5 + $0x8] sm:$0xff] }
  0x5d   :  { %v85_v20 = vpop.permute.xlu2 %84 }
  0x5e   :  { %vm90_vm4 = vcmp.eq.s32.totalorder %v85_v20, %v258_v24 }
  0x5f   :  { %vm92_vm7 = vmand %vm90_vm4, %vm78_vm3 }
  0x60   :  { %v246_v27 = vsel %vm92_vm7, 1.0, %v277_v7 }
  0x61   :  { %v170_v29 = vsel %vm104_vm2, %v246_v27, 0.0 }
  0x65   :  { %v88_v26 = vpop.permute.xlu2 %87 }
  0x66   :  { %vm91_vm6 = vcmp.eq.s32.totalorder %v88_v26, %v258_v24 }
  0x67   :  { %vm93_vm8 = vmand %vm91_vm6, %vm79_vm5 }
  0x68   :  { %v247_v28 = vsel %vm93_vm8, 1.0, %v277_v7 }
  0x69   :  { %v173_v30 = vsel %vm104_vm2, %v247_v28, 0.0 }
  0x87   :  { %v61_v8 = vpop.f32.mrf.mxu0 }
  0x88   :  { %v105_v9 = vsel %vm104_vm2, %v61_v8, -inf  ;;  %v156_v45 = vmul.f32 %v246_v27, %v61_v8 }
  0x89   :  { %106 = vmax.xlane.f32.xlu0 %v105_v9 }
  0x8a   :  { %v158_v46 = vsel %vm104_vm2, %v156_v45, 0.0 }
  0x8f   :  { %v63_v10 = vpop.f32.mrf.mxu0 }
  0x90   :  { %v108_v11 = vsel %vm104_vm2, %v63_v10, -inf  ;;  %v157_v47 = vmul.f32 %v247_v28, %v63_v10 }
  0x91   :  { %109 = vmax.xlane.f32.xlu0 %v108_v11 }
  0x92   :  { %v161_v48 = vsel %vm104_vm2, %v157_v47, 0.0 }
  0x99   :  { %171 = vadd.xlane.f32.xlu0 %v170_v29 }
  0xfc   :  { %v107_v13 = vpop.xlane.xlu0 %106 }
  0xfd   :  { %v111_v14 = vmax.f32 %v327_v12, %v107_v13 }
  0xff   :  { %v113_v15 = vsub.f32 %v327_v12, %v111_v14  ;;  %152 = vst.msk [vmem:[#allocation2] sm:$0xff] %vm22_vm1, %v111_v14  ;;  %121 = vperm.xlu1 %255, %v111_v14  }
 0x101   :  { %v115_v55 = vmul.f32 1.442695, %v113_v15 }
 0x104   :  { %v110_v17 = vpop.xlane.xlu0 %109 }
 0x105   :  { %v112_v18 = vmax.f32 %v103_v16, %v110_v17 }
 0x106   :  { %v183_v28 = vld [vmem:[#allocation2] sm:$0xff] }
 0x107   :  { %v114_v19 = vsub.f32 %v103_v16, %v112_v18  ;;  %153 = vst.msk [vmem:[#allocation2 + $0x8] sm:$0xff] %vm22_vm1, %v112_v18  ;;  %126 = vperm.xlu1 %255, %v112_v18  }
 0x109   :  { %v117_v56 = vmul.f32 1.442695, %v114_v19 }
 0x10c   :  { %v172_v52 = vpop.xlane.xlu0 %171 }
 0x10d   :  { %v176_v54 = vadd.f32 %v172_v52, %v168_v50 }
 0x10f   :  { %178 = vst.msk [vmem:[#allocation5] sm:$0xff] %vm22_vm1, %v176_v54 }
 0x116   :  { %v195_v57 = vld [vmem:[#allocation5] sm:$0xff] }
 0x117   :  { %vm202_vm9 = vweird.f32 %v195_v57  ;;  %v208_v15 = vand.u32 2147483648, %v195_v57  ;;  %v206_v19 = vand.u32 2147483647, %v195_v57 }
 0x119   :  { %v209_v21 = vor.u32 1.1754944e-38, %v208_v15  ;;  %vm207_vm12 = vcmp.eq.f32.partialorder %v206_v19, 8.507059e+37 }
 0x131   :  { %174 = vadd.xlane.f32.xlu1 %v173_v30 }
 0x171   :  { %v122_v31 = vpop.permute.xlu1 %121 }
 0x172   :  { %v129_v32 = vsub.f32 %v61_v8, %v122_v31 }
 0x174   :  { %v131_v33 = vmul.f32 1.442695, %v129_v32 }
 0x176   :  { %259 = vpow2.f32 %v131_v33 }
 0x179   :  { %v127_v34 = vpop.permute.xlu1 %126 }
 0x17a   :  { %v130_v35 = vsub.f32 %v63_v10, %v127_v34  ;;  %v154_v10 = vld [vmem:[#allocation4] sm:$0xff] }
 0x17c   :  { %v260_v37 = vpop.eup %259  ;;  %v133_v38 = vmul.f32 1.442695, %v130_v35 }
 0x17d   :  { %v135_v39 = vmul.f32 %v260_v37, %v248_v36 }
 0x17e   :  { %261 = vpow2.f32 %v133_v38 }
 0x17f   :  { %v141_v40 = vsel %vm104_vm2, %v135_v39, 0.0  ;;  %263 = vpow2.f32 %v115_v55 }
 0x180   :  { %142 = vadd.xlane.f32.xlu2 %v141_v40  ;;  %265 = vpow2.f32 %v117_v56 }
 0x181   :  { %267 = vrcp.f32 %v195_v57 }
 0x184   :  { %v262_v42 = vpop.eup %261 }
 0x185   :  { %v136_v43 = vmul.f32 %v262_v42, %v249_v41  ;;  %v264_v58 = vpop.eup %263  ;;  %v184_v42 = vld [vmem:[#allocation2 + $0x8] sm:$0xff] }
 0x186   :  { %v139_v60 = vmul.f32 %v264_v58, %v137_v59  ;;  %v266_v63 = vpop.eup %265 }
 0x187   :  { %v144_v44 = vsel %vm104_vm2, %v136_v43, 0.0  ;;  %v268_v1 = vpop.eup %267  ;;  %v140_v4 = vmul.f32 %v266_v63, %v138_v2 }
 0x188   :  { %145 = vadd.xlane.f32.xlu0 %v144_v44  ;;  %v198_v3 = vmul.f32 %v268_v1, %v195_v57  ;;  %vm203_vm10 = vweird.f32 %v268_v1 }
 0x189   :  { %vm204_vm11 = vmor %vm202_vm9, %vm203_vm10 }
 0x18a   :  { %v199_v7 = vsub.f32 1.0, %v198_v3 }
 0x18c   :  { %v200_v12 = vmul.f32 %v268_v1, %v199_v7 }
 0x18e   :  { %v201_v18 = vadd.f32 %v268_v1, %v200_v12 }
 0x190   :  { %159 = vadd.xlane.f32.xlu0 %v158_v46  ;;  %v205_v25 = vsel %vm204_vm11, %v268_v1, %v201_v18 }
 0x191   :  { %v210_v30 = vsel %vm207_vm12, %v209_v21, %v205_v25 }
 0x198   :  { %162 = vadd.xlane.f32.xlu0 %v161_v48 }
 0x1a4   :  { %v175_v51 = vpop.xlane.xlu1 %174 }
 0x1a5   :  { %v177_v53 = vadd.f32 %v175_v51, %v169_v49 }
 0x1a7   :  { %179 = vst.msk [vmem:[#allocation5 + $0x8] sm:$0xff] %vm22_vm1, %v177_v53 }
 0x1ae   :  { %v196_v0 = vld [vmem:[#allocation5 + $0x8] sm:$0xff] }
 0x1af   :  { %269 = vrcp.f32 %v196_v0  ;;  %vm217_vm13 = vweird.f32 %v196_v0  ;;  %v223_v29 = vand.u32 2147483648, %v196_v0  ;;  %v221_v35 = vand.u32 2147483647, %v196_v0 }
 0x1b1   :  { %v224_v38 = vor.u32 1.1754944e-38, %v223_v29  ;;  %vm222_vm0 = vcmp.eq.f32.partialorder %v221_v35, 8.507059e+37 }
 0x1b5   :  { %v270_v9 = vpop.eup %269 }
 0x1b6   :  { %v213_v11 = vmul.f32 %v270_v9, %v196_v0  ;;  %vm218_vm14 = vweird.f32 %v270_v9 }
 0x1b7   :  { %vm219_vm15 = vmor %vm217_vm13, %vm218_vm14 }
 0x1b8   :  { %v214_v16 = vsub.f32 1.0, %v213_v11 }
 0x1ba   :  { %v215_v23 = vmul.f32 %v270_v9, %v214_v16 }
 0x1bc   :  { %v216_v34 = vadd.f32 %v270_v9, %v215_v23 }
 0x1be   :  { %v220_v41 = vsel %vm219_vm15, %v270_v9, %v216_v34 }
 0x1bf   :  { %v225_v43 = vsel %vm222_vm0, %v224_v38, %v220_v41 }
 0x1f3   :  { %v143_v61 = vpop.xlane.xlu2 %142 }
 0x1f4   :  { %v147_v62 = vadd.f32 %v143_v61, %v139_v60 }
 0x1f6   :  { %150 = vst.msk [vmem:[#allocation3] sm:$0xff] %vm22_vm1, %v147_v62 }
 0x1fb   :  { %v146_v5 = vpop.xlane.xlu0 %145 }
 0x1fc   :  { %v148_v6 = vadd.f32 %v146_v5, %v140_v4 }
 0x1fd   :  { %v185_v8 = vld [vmem:[#allocation3] sm:$0xff] }
 0x1fe   :  { %151 = vst.msk [vmem:[#allocation3 + $0x8] sm:$0xff] %vm22_vm1, %v148_v6  ;;  %271 = vlog2.f32 %v185_v8 }
 0x203   :  { %v160_v13 = vpop.xlane.xlu0 %159 }
 0x204   :  { %v164_v14 = vadd.f32 %v160_v13, %v154_v10  ;;  %v272_v20 = vpop.eup %271 }
 0x205   :  { %v186_v17 = vld [vmem:[#allocation3 + $0x8] sm:$0xff]  ;;  %v188_v24 = vmul.f32 0.6931472, %v272_v20 }
 0x206   :  { %166 = vst.msk [vmem:[#allocation4] sm:$0xff] %vm22_vm1, %v164_v14  ;;  %273 = vlog2.f32 %v186_v17 }
 0x207   :  { %v191_v32 = vadd.f32 %v188_v24, %v183_v28 }
 0x20b   :  { %v163_v26 = vpop.xlane.xlu0 %162 }
 0x20c   :  { %v165_v27 = vadd.f32 %v163_v26, %v155_v22  ;;  %v274_v36 = vpop.eup %273 }
 0x20d   :  { %v193_v31 = vld [vmem:[#allocation4] sm:$0xff]  ;;  %v190_v39 = vmul.f32 0.6931472, %v274_v36 }
 0x20e   :  { %v211_v33 = vmul.f32 %v210_v30, %v193_v31  ;;  %167 = vst.msk [vmem:[#allocation4 + $0x8] sm:$0xff] %vm22_vm1, %v165_v27 }
 0x20f   :  { %v192_v45 = vadd.f32 %v190_v39, %v184_v42 }
 0x210   :  { %v227_v37 = vsub.f32 %v211_v33, %v191_v32 }
 0x212   :  { %v229_v40 = vmul.f32 -1.0, %v227_v37 }
 0x214   :  { %231 = vst.msk [vmem:[%s364_s4] sm:$0xff] %vm22_vm1, %v229_v40 }
 0x215   :  { %v194_v44 = vld [vmem:[#allocation4 + $0x8] sm:$0xff] }
 0x216   :  { %v226_v46 = vmul.f32 %v225_v43, %v194_v44 }
 0x218   :  { %v228_v47 = vsub.f32 %v226_v46, %v192_v45 }
 0x21a   :  { %v230_v48 = vmul.f32 -1.0, %v228_v47 }
 0x21c   :  { %232 = vst.msk [vmem:[%s364_s4 + $0x8] sm:$0xff] %vm22_vm1, %v230_v48 }

</bundles_post_ra>
